<compile_context>
chip_gen: v7x
topology: tpu7x:2x2x1
jax: 0.10.0
libtpu: 0.0.40
codegen_flags: <defaults>
</compile_context>

<pallas_src>
import jax
import jax.numpy as jnp
from jax.experimental import pallas as pl
from jax.experimental.pallas import tpu as pltpu


def _round_up(x, m):
    return ((x + m - 1) // m) * m


def _pick_divisor(n_pad, max_tile):
    """Largest of {1024,512,256,128} that divides n_pad and is <= max_tile."""
    for cand in (1024, 512, 256, 128):
        if cand <= max_tile and n_pad % cand == 0:
            return cand
    return 128  # n_pad is always a multiple of 128


def _make_gcn_kernel(*, apply_weight, h_resident, tile_k, compute_dtype):
    """Build the kernel body (all branching here is trace-time Python).

    apply_weight=False (premultiplied path, F_out <= F_in):
        args = (adj_ref, h_ref, b_ref, o_ref, acc_ref);   out = adj @ h + b
    apply_weight=True  (F_out > F_in):
        args = (adj_ref, x_ref, w_ref, b_ref, o_ref, acc_ref);
        out = (adj @ x) @ W^T + b, second matmul once per row tile on the f32
        accumulator (no bf16 re-round of the intermediate).
    """

    def _accumulate(adj_ref, h_ref, acc_ref, k):
        a = adj_ref[...].astype(compute_dtype)   # per-tile cast; adj stays in
        if h_resident:                            # its HBM dtype (no host pass)
            off = pl.multiple_of(k * tile_k, tile_k)
            h = h_ref[pl.ds(off, tile_k), :]
        else:
            h = h_ref[...]
        acc_ref[...] += jnp.dot(a, h, preferred_element_type=jnp.float32)

    if apply_weight:
        def kernel(adj_ref, h_ref, w_ref, b_ref, o_ref, acc_ref):
            k = pl.program_id(1)

            @pl.when(k == 0)
            def _init():
                acc_ref[...] = jnp.zeros_like(acc_ref)

            _accumulate(adj_ref, h_ref, acc_ref, k)

            @pl.when(k == pl.num_programs(1) - 1)
            def _finalize():
                out = jnp.dot(acc_ref[...], w_ref[...],
                              preferred_element_type=jnp.float32)
                o_ref[...] = (out + b_ref[...]).astype(o_ref.dtype)
    else:
        def kernel(adj_ref, h_ref, b_ref, o_ref, acc_ref):
            k = pl.program_id(1)

            @pl.when(k == 0)
            def _init():
                acc_ref[...] = jnp.zeros_like(acc_ref)

            _accumulate(adj_ref, h_ref, acc_ref, k)

            @pl.when(k == pl.num_programs(1) - 1)
            def _finalize():
                o_ref[...] = (acc_ref[...] + b_ref[...]).astype(o_ref.dtype)

    return kernel


def gcn_layer(adj, x, weight, bias, *, max_tile=512,
              compute_dtype=jnp.bfloat16, premultiply_weight=None):
    """y = (adj @ x) @ weight^T + bias   (== torch: self.linear(spmm(adj, x))).

    adj: (N, N) dense adjacency (any float dtype; bf16 streams cheapest),
    x: (N, F_in), weight: (F_out, F_in), bias: (F_out,).
    max_tile: raise to 1024 on v6e for a slightly better HBM-roofline fraction.
    """
    n, f_in = x.shape
    f_out = weight.shape[0]
    out_dtype = x.dtype

    if premultiply_weight is None:
        premultiply_weight = f_out <= f_in
    apply_weight = not premultiply_weight

    # Lane-dense feature padding; adjacency padded only to the next multiple
    # of 128 (never up to the tile) -> no (n_pad/n)^2 blow-up for awkward N.
    f_in_p = _round_up(f_in, 128)
    f_out_p = _round_up(f_out, 128)
    n_pad = _round_up(n, 128)

    # --- small (O(N*F) / O(F^2)) operands: padding/casting these is cheap ----
    if premultiply_weight:
        # Tiny prologue matmul once, in f32; kernel then streams adj @ h.
        h = jnp.dot(x, weight.T, preferred_element_type=jnp.float32)
        c_p = f_out_p
        h_p = jnp.pad(h, ((0, n_pad - n), (0, c_p - f_out))).astype(compute_dtype)
        w_p = None
    else:
        c_p = f_in_p
        h_p = jnp.pad(x, ((0, n_pad - n), (0, c_p - f_in))).astype(compute_dtype)
        # W^T kept resident in f32 so the finalize matmul uses the f32 acc.
        w_p = jnp.pad(weight.T.astype(jnp.float32),
                      ((0, f_in_p - f_in), (0, f_out_p - f_out)))
    b_p = jnp.pad(bias.astype(jnp.float32),
                  (0, f_out_p - f_out)).reshape(1, f_out_p)

    # --- adjacency: no host-side cast; zero-copy when already 128-aligned ----
    adj_p = adj if n_pad == n else jnp.pad(adj, ((0, n_pad - n), (0, n_pad - n)))

    # --- tiling ---------------------------------------------------------------
    tk = _pick_divisor(n_pad, max_tile)
    tm = _pick_divisor(n_pad, max_tile)
    if n_pad // tm == 1 and tm > 128:
        tm //= 2                       # >= 2 row tiles so v7x's 2 TCs both work

    adj_bytes = jnp.dtype(adj_p.dtype).itemsize
    c_bytes = jnp.dtype(compute_dtype).itemsize
    out_bytes = jnp.dtype(out_dtype).itemsize

    # Keep h fully VMEM-resident (DMA'd once) when it fits a small budget.
    h_resident = 2 * n_pad * c_p * c_bytes <= (12 << 20)

    def _footprint(tm_, tk_, h_res):
        tot = 2 * tm_ * tk_ * adj_bytes                      # adj, double-buf
        tot += 2 * (n_pad if h_res else tk_) * c_p * c_bytes  # h / x
        tot += 2 * tm_ * f_out_p * out_bytes                 # output tile
        tot += tm_ * c_p * 4                                 # f32 accumulator
        if apply_weight:
            tot += 2 * f_in_p * f_out_p * 4                  # resident W^T
        tot += 2 * f_out_p * 4                               # bias
        return tot

    budget = 40 << 20                  # safe on v5e / v6e / v7x (64 MiB VMEM)
    while _footprint(tm, tk, h_resident) > budget:
        if tk > 128 and tk >= tm:
            tk //= 2
        elif tm > 128:
            tm //= 2
        elif h_resident:
            h_resident = False
        else:
            break
    vmem_limit = int(max(32 << 20, _footprint(tm, tk, h_resident) + (8 << 20)))

    grid = (n_pad // tm, n_pad // tk)

    kernel = _make_gcn_kernel(apply_weight=apply_weight, h_resident=h_resident,
                              tile_k=tk, compute_dtype=compute_dtype)

    adj_spec = pl.BlockSpec((tm, tk), lambda i, k: (i, k))
    if h_resident:
        h_spec = pl.BlockSpec((n_pad, c_p), lambda i, k: (0, 0))
    else:
        h_spec = pl.BlockSpec((tk, c_p), lambda i, k: (k, 0))
    b_spec = pl.BlockSpec((1, f_out_p), lambda i, k: (0, 0))
    out_spec = pl.BlockSpec((tm, f_out_p), lambda i, k: (i, 0))

    in_specs = [adj_spec, h_spec]
    operands = [adj_p, h_p]
    if apply_weight:
        in_specs.append(pl.BlockSpec((f_in_p, f_out_p), lambda i, k: (0, 0)))
        operands.append(w_p)
    in_specs.append(b_spec)
    operands.append(b_p)

    out_p = pl.pallas_call(
        kernel,
        out_shape=jax.ShapeDtypeStruct((n_pad, f_out_p), out_dtype),
        grid_spec=pltpu.PrefetchScalarGridSpec(
            num_scalar_prefetch=0,
            grid=grid,
            in_specs=in_specs,
            out_specs=out_spec,
            scratch_shapes=[pltpu.VMEM((tm, c_p), jnp.float32)],
        ),
        compiler_params=pltpu.CompilerParams(
            dimension_semantics=("parallel", "arbitrary"),
            vmem_limit_bytes=vmem_limit),
    )(*operands)

    return out_p[:n, :f_out]


def _reference(adj, x, weight, bias):
    return (adj.astype(jnp.float32) @ x.astype(jnp.float32)) @ weight.T + bias


if __name__ == "__main__":
    key = jax.random.PRNGKey(0)

    def _run_case(case_key, n, f_in, f_out):
        k_adj, k_x, k_w, k_b = jax.random.split(case_key, 4)
        x = jax.random.normal(k_x, (n, f_in), dtype=jnp.float32)
        adj = (jax.random.uniform(k_adj, (n, n)) > 0.5).astype(jnp.float32)
        bound = 1.0 / (f_in ** 0.5)
        weight = jax.random.uniform(k_w, (f_out, f_in), minval=-bound,
                                    maxval=bound, dtype=jnp.float32)
        bias = jax.random.uniform(k_b, (f_out,), minval=-bound, maxval=bound,
                                  dtype=jnp.float32)

        out = jax.block_until_ready(gcn_layer(adj, x, weight, bias))
        ref = _reference(adj, x, weight, bias)
        assert out.shape == (n, f_out)
        err = float(jnp.max(jnp.abs(out - ref)))
        # Tolerance budget: bf16 MXU operand rounding vs a pure f32 reference.
        assert jnp.allclose(out, ref, atol=2e-1, rtol=2e-2), \
            f"max abs err = {err}"

    k1, k2 = jax.random.split(key)
    # Premultiplied (F_out <= F_in) path, ragged N: exercises 128-padding,
    # the 2-row-tile grid, and the VMEM-resident h with in-kernel pl.ds slices.
    _run_case(k1, n=200, f_in=64, f_out=32)
    # Fused two-matmul (F_out > F_in) path with the f32 finalize matmul.
    _run_case(k2, n=64, f_in=16, f_out=32)

    print("KERNEL_OK")
</pallas_src>

<mosaic_0001>
module attributes {stable_mosaic.version = 11 : i64} {
  func.func @kernel(%arg0: i32, %arg1: i32, %arg2: memref<128x256xf32, #tpu.memory_space<vmem>>, %arg3: memref<256x128xbf16, #tpu.memory_space<vmem>>, %arg4: memref<1x128xf32, #tpu.memory_space<vmem>>, %arg5: memref<128x128xf32, #tpu.memory_space<vmem>>, %arg6: memref<128x128xf32, #tpu.memory_space<vmem>>) attributes {dimension_semantics = [#tpu.dimension_semantics<parallel>, #tpu.dimension_semantics<arbitrary>], iteration_bounds = array<i64: 2, 1>, scalar_prefetch = 0 : i64, scratch_operands = 1 : i64, tpu.core_type = #tpu.core_type<tc>, window_params = [{transform_indices = @transform_0, window_bounds = array<i64: 128, 256>}, {pipeline_mode = #tpu.pipeline_mode<synchronous>, transform_indices = @transform_1, window_bounds = array<i64: 256, 128>}, {pipeline_mode = #tpu.pipeline_mode<synchronous>, transform_indices = @transform_2, window_bounds = array<i64: 1, 128>}, {transform_indices = @transform_3, window_bounds = array<i64: 128, 128>}]} {
    %c0_i32 = arith.constant 0 : i32
    %0 = arith.cmpi eq, %arg1, %c0_i32 : i32
    %1 = arith.extui %0 : i1 to i32
    %c0_i32_0 = arith.constant 0 : i32
    %2 = arith.cmpi ne, %1, %c0_i32_0 : i32
    scf.if %2 {
      %cst_9 = arith.constant 0.000000e+00 : f32
      %16 = vector.broadcast %cst_9 : f32 to vector<128x128xf32>
      %c0_10 = arith.constant 0 : index
      %c0_11 = arith.constant 0 : index
      %17 = vector.load %arg6[%c0_10, %c0_11] : memref<128x128xf32, #tpu.memory_space<vmem>>, vector<128x128xf32>
      tpu.vector_store %arg6[%c0_10, %c0_11], %16 {strides = array<i32>} : memref<128x128xf32, #tpu.memory_space<vmem>>, vector<128x128xf32>,
    } else {
    }
    %c0 = arith.constant 0 : index
    %c0_1 = arith.constant 0 : index
    %3 = vector.load %arg2[%c0, %c0_1] : memref<128x256xf32, #tpu.memory_space<vmem>>, vector<128x256xf32>
    %4 = arith.truncf %3 : vector<128x256xf32> to vector<128x256xbf16>
    %c256_i32 = arith.constant 256 : i32
    %5 = arith.muli %arg1, %c256_i32 : i32
    %6 = tpu.assume_multiple %5, 256 : i32
    %7 = arith.index_cast %6 : i32 to index
    %c0_2 = arith.constant 0 : index
    %8 = vector.load %arg3[%7, %c0_2] : memref<256x128xbf16, #tpu.memory_space<vmem>>, vector<256x128xbf16>
    %c0_3 = arith.constant 0 : index
    %c0_4 = arith.constant 0 : index
    %9 = vector.load %arg6[%c0_3, %c0_4] : memref<128x128xf32, #tpu.memory_space<vmem>>, vector<128x128xf32>
    %cst = arith.constant dense<0.000000e+00> : vector<128x128xf32>
    %10 = tpu.matmul %4, %8, %cst {dimension_numbers = #tpu.dot_dimension_numbers<[1], [0], [0], [1], [0, 0, 1, 1], [], []>} : vector<128x256xbf16>, vector<256x128xbf16>, vector<128x128xf32> -> vector<128x128xf32>
    %11 = arith.addf %9, %10 : vector<128x128xf32>
    %c0_5 = arith.constant 0 : index
    %c0_6 = arith.constant 0 : index
    %12 = vector.load %arg6[%c0_5, %c0_6] : memref<128x128xf32, #tpu.memory_space<vmem>>, vector<128x128xf32>
    tpu.vector_store %arg6[%c0_5, %c0_6], %11 {strides = array<i32>} : memref<128x128xf32, #tpu.memory_space<vmem>>, vector<128x128xf32>,
    %c0_i32_7 = arith.constant 0 : i32
    %13 = arith.cmpi eq, %arg1, %c0_i32_7 : i32
    %14 = arith.extui %13 : i1 to i32
    %c0_i32_8 = arith.constant 0 : i32
    %15 = arith.cmpi ne, %14, %c0_i32_8 : i32
    scf.if %15 {
      %c0_9 = arith.constant 0 : index
      %c0_10 = arith.constant 0 : index
      %16 = vector.load %arg6[%c0_9, %c0_10] : memref<128x128xf32, #tpu.memory_space<vmem>>, vector<128x128xf32>
      %c0_11 = arith.constant 0 : index
      %c0_12 = arith.constant 0 : index
      %17 = vector.load %arg4[%c0_11, %c0_12] : memref<1x128xf32, #tpu.memory_space<vmem>>, vector<1x128xf32>
      %18 = vector.broadcast %17 : vector<1x128xf32> to vector<128x128xf32>
      %19 = arith.addf %16, %18 : vector<128x128xf32>
      %c0_13 = arith.constant 0 : index
      %c0_14 = arith.constant 0 : index
      %20 = vector.load %arg5[%c0_13, %c0_14] : memref<128x128xf32, #tpu.memory_space<vmem>>, vector<128x128xf32>
      tpu.vector_store %arg5[%c0_13, %c0_14], %19 {strides = array<i32>} : memref<128x128xf32, #tpu.memory_space<vmem>>, vector<128x128xf32>,
    } else {
    }
    return
  }
  func.func @transform_0(%arg0: i32, %arg1: i32) -> (i32, i32) {
    %c0_i32 = arith.constant 0 : i32
    return %arg0, %arg1 : i32, i32
  }
  func.func @transform_1(%arg0: i32, %arg1: i32) -> (i32, i32) {
    %c0_i32 = arith.constant 0 : i32
    %c0_i32_0 = arith.constant 0 : i32
    %c0_i32_1 = arith.constant 0 : i32
    return %c0_i32, %c0_i32_0 : i32, i32
  }
  func.func @transform_2(%arg0: i32, %arg1: i32) -> (i32, i32) {
    %c0_i32 = arith.constant 0 : i32
    %c0_i32_0 = arith.constant 0 : i32
    %c0_i32_1 = arith.constant 0 : i32
    return %c0_i32, %c0_i32_0 : i32, i32
  }
  func.func @transform_3(%arg0: i32, %arg1: i32) -> (i32, i32) {
    %c0_i32 = arith.constant 0 : i32
    %c0_i32_0 = arith.constant 0 : i32
    return %arg0, %c0_i32 : i32, i32
  }
}

</mosaic_0001>

<bundles_post_ra>
// kernel: tpu_custom_call.1
= control target key start
LH: loop header
LB: loop body
LE: loop exit
PB: predicated region body
PF: predicated region fallthrough
CT: control target
= control target key end

     0   :  { %8 = vsyncpa [#allocation4], 0  ;;  %s1421_s0 = inlined_call_operand.hbm [shape: f32[256,256], index: 0, kind: input, shape index: {}]   ;;  %s1422_s1 = inlined_call_operand.hbm [shape: bf16[256,128], index: 1, kind: input, shape index: {}]   ;;  %s1423_s2 = inlined_call_operand.vmem [shape: f32[1,128], index: 2, kind: input, shape index: {}]   ;;  %s1424_s3 = inlined_call_operand.hbm [shape: f32[256,128], index: 3, kind: output, shape index: {}]  }
   0x1   :  { %10 = vsyncpa [#allocation4 + $0x1], 0 }
   0x2   :  { %11 = vsyncpa [#allocation7], 0 }
   0x3   :  { %12 = vsyncpa [#allocation5], 0 }
   0x4   :  { %14 = vsyncpa [#allocation5 + $0x1], 0  ;;  %s1127_s12 = smov 0   ;;  %s1129_s13 = smov 0  }
   0x5   :  { %s1131_s14 = smov 0   ;;  %s1133_s15 = smov 0  }
   0x6   :  { %s1135_s16 = smov 0   ;;  %s1137_s17 = smov 0  }
   0x7 LB: > { %s739_s18 = sadd.s32 4294967295, %s1096_s17   ;;  %s740_s19 = sadd.s32 4294967294, %s1096_s17   ;;  %s1096_s17 = sphi %s1137_s17, %s20_s17   ;;  %s1092_s16 = sphi %s1135_s16, %s1448_s16   ;;  %s1088_s15 = sphi %s1133_s15, %s1447_s15   ;;  %s1084_s14 = sphi %s1131_s14, %s1446_s14   ;;  %s1080_s13 = sphi %s1129_s13, %s1445_s13   ;;  %s1076_s12 = sphi %s1127_s12, %s1444_s12  }
   0x8   : > { %p54_p0 = scmp.ne.s32.totalorder %s1080_s13, %s1076_s12  ;;  %p1161_p1 = scmp.eq.s32.totalorder %s739_s18, 0 }
   0x9   : > { %p1165_p2 = scmp.eq.s32.totalorder %s739_s18, 1  ;;  %p126_p3 = scmp.eq.s32.totalorder %s740_s19, 1 }
   0xa   : > { %s1429_s20 = scalar_select %p1161_p1, 1, 0 }
   0xb   : > { %s1430_s21 = scalar_select %p1165_p2, 1, 0 }
   0xc   : > { %p1171_p4 = por %p1161_p1, %p54_p0  ;;  %p741_p5 = scmp.ge.s32.totalorder %s1096_s17, 1 }
   0xd   : > { %p1176_p6 = por %p126_p3, %p54_p0  ;;  %p133_p7 = scmp.lt.s32.totalorder %s1096_s17, 3 }
   0xe   : > { %s1431_s22 = scalar_select %p1171_p4, 1, 0 }
   0xf   : > { %s1432_s23 = scalar_select %p1176_p6, 1, 0 }
  0x10   : > { %p1181_p8 = pnand %p741_p5, %p133_p7  ;;  %s1098_s25 = smov [#allocation6]  }
  0x11   : > { %s145_s26 = sshll.u32 %s1098_s25, 4  ;;  %s32_s28 = sadd.s32 1, %s1092_s16  ;;  %s146_s26 = int_to_ptr.vmem [resolvable:$true] %s145_s26 }
  0x12   : > { %s1433_s24 = scalar_select %p1181_p8, 1, 0 }
  0x13   : > { %p865_p9 = pneg %p1181_p8  ;;  %s952_s4 = scalar_lea.hbm %s1422_s1, 2048 }
  0x14   : > { %p953_p12 = scmp.ne.s32.totalorder %s1422_s1, %s952_s4  ;;  %p959_p5 = scmp.lt.u32.totalorder %s952_s4, %s1422_s1 }
  0x15   : > { %p1190_p11 = pnand %p865_p9, %p1161_p1 }
  0x17   : > { %p954_p13 = pneg %p1190_p11 }
  0x19   : > { %p955_p0 = pnand %p954_p13, %p953_p12 }
  0x1b   : > { %p956_p3 = pneg %p955_p0 }
  0x1d   : > { %p961_p7 = pnand %p959_p5, %p956_p3 }
  0x1f   : > { %964 = shalt.err (!%p961_p7)
}
  0x20   : > { %s965_s9 = scalar_lea.vmem %s146_s26, 2048  ;;  %p973_p1 = scmp.lt.s32.totalorder %s146_s26, %s146_s26 }
  0x21   : > { %p966_p9 = scmp.ne.s32.totalorder %s146_s26, %s965_s9  ;;  %p974_p4 = scmp.lt.s32.totalorder %s965_s9, %s965_s9 }
  0x23   : > { %p968_p10 = pnand %p966_p9, %p954_p13  ;;  %p975_p8 = por %p974_p4, %p973_p1 }
  0x25   : > { %p969_p6 = pneg %p968_p10 }
  0x27   : > { %p976_p2 = pnand %p975_p8, %p969_p6 }
  0x29   : > { %979 = shalt.err (!%p976_p2)
}
  0x2a   : > { %s1099_s10 = smov 64   ;;  %s1100_s11 = smov 4  }
  0x2b   : > { %868 = dma.hbm_to_vmem [thread:$0]  (!%p1190_p11), %s1422_s1, 2048, %s146_s26, [#allocation7], %s1099_s10, %s1099_s10, %s1100_s11  }
  0x2c   : > { %p34_p1 = scmp.ge.s32.totalorder %s32_s28, 2  ;;  %s41_s25 = sadd.s32 1, %s1084_s14 }
  0x2d   : > { %p48_p2 = scmp.ne.s32.totalorder %s1084_s14, %s1080_s13  ;;  %p49_p4 = scmp.eq.s32.totalorder %s1096_s17, 0 }
  0x2e   : > { %s1450_s28 = smov (%p34_p1, %s32_s28), 0  ;;  %p1436_p8 = scmp.ne.s32.totalorder %s1430_s21, 0 }
  0x2f   : > { %p1217_p6 = por %p49_p4, %p48_p2  ;;  %s36_s27 = ssub.s32 %s1092_s16, %s1450_s28 }
  0x30   : > { %p1223_p10 = por %p1436_p8, %p48_p2  ;;  %p878_p12 = scmp.lt.s32.totalorder %s1096_s17, 2 }
  0x31   : > { %p39_p11 = scmp.eq.s32.totalorder %s36_s27, 0  ;;  %s162_s26 = sand.u32 1, %s1084_s14  }
  0x32   : > { %s744_s4 = sshll.u32 %s162_s26, 8  ;;  %s775_s6 = sshll.u32 %s1092_s16, 12 }
  0x33   : > { %s1232_s5 = scalar_select %p39_p11, %s1084_s14, %s41_s25  }
  0x34   : > { %s1238_s9 = scalar_lea.hbm %s1421_s0, %s775_s6  ;;  %s166_s21 = scalar_lea.vmem [#allocation3], %s744_s4 }
  0x35   : > { %s176_s10 = sshll.u32 %s166_s21, 4  ;;  %p1244_p13 = pnand %p878_p12, %p1217_p6  ;;  %s1240_s10 = int_to_ptr.vmem [resolvable:$true] %s176_s10 }
  0x36   : > { %s1248_s18 = scalar_lea.sflag [#allocation4], %s162_s26  ;;  %s980_s19 = scalar_lea.hbm %s1238_s9, 4096 }
  0x37   : > { %p981_p0 = scmp.ne.s32.totalorder %s1238_s9, %s980_s19  ;;  %p982_p3 = pneg %p1244_p13 }
  0x38   : > { %s985_s29 = scalar_lea.hbm %s1421_s0, 8192  ;;  %p986_p9 = scmp.lt.u32.totalorder %s1238_s9, %s1421_s0 }
  0x39   : > { %p983_p5 = pnand %p982_p3, %p981_p0  ;;  %p987_p1 = scmp.lt.u32.totalorder %s985_s29, %s980_s19 }
  0x3a   : > { %p989_p4 = scmp.lt.u32.totalorder %s980_s19, %s1238_s9 }
  0x3b   : > { %p984_p7 = pneg %p983_p5  ;;  %p988_p2 = por %p987_p1, %p986_p9 }
  0x3d   : > { %p990_p6 = por %p989_p4, %p988_p2 }
  0x3f   : > { %p991_p8 = pnand %p990_p6, %p984_p7 }
  0x41   : > { %994 = shalt.err (!%p991_p8)
}
  0x42   : > { %s995_s26 = scalar_lea.vmem %s1240_s10, 4096  ;;  %s1101_s7 = smov [#allocation3]  }
  0x43   : > { %p996_p12 = scmp.ne.s32.totalorder %s1240_s10, %s995_s26  ;;  %s1000_s8 = sshll.u32 %s1101_s7, 4  ;;  %s1001_s8 = int_to_ptr.vmem [resolvable:$false] %s1000_s8 }
  0x44   : > { %s1002_s21 = scalar_lea.vmem %s1001_s8, 8192  ;;  %p1003_p5 = scmp.lt.s32.totalorder %s1240_s10, %s1001_s8 }
  0x45   : > { %p998_p11 = pnand %p996_p12, %p982_p3  ;;  %p1004_p9 = scmp.lt.s32.totalorder %s1002_s21, %s995_s26 }
  0x47   : > { %p999_p0 = pneg %p998_p11  ;;  %p1005_p1 = por %p1004_p9, %p1003_p5 }
  0x49   : > { %p1006_p2 = pnand %p1005_p1, %p999_p0 }
  0x4b   : > { %1009 = shalt.err (!%p1006_p2)
}
  0x4c   : > { %s1102_s19 = smov 256   ;;  %s1103_s25 = smov 16  }
  0x4d   : > { %872 = dma.hbm_to_vmem [thread:$0]  (!%p1244_p13), %s1238_s9, 4096, %s1240_s10, %s1248_s18, %s1102_s19, %s1102_s19, %s1103_s25  }
  0x4e   : > { %p1439_p3 = scmp.ne.s32.totalorder %s1433_s24, 0 }
  0x4f   : > { %s1279_s27 = sand.u32 (!%p1439_p3), 1, %s1080_s13   ;;  %p1440_p7 = scmp.ne.s32.totalorder (!%p1439_p3), %s1431_s22, 0 }
  0x50   : > { %188 = sbr.rel (%p1439_p3) target bundleno = 382 (0x17e), region = 32  ;;  %s749_s29 = sshll.u32 (!%p1439_p3), %s1279_s27, 8 }
  0x51   : > { %s191_s4 = scalar_lea.sflag (!%p1439_p3), [#allocation4], %s1279_s27  ;;  %s1283_s6 = scalar_lea.vmem (!%p1439_p3), [#allocation3], %s749_s29 }
  0x57   : > { %1063 = dma.done.wait (%p1440_p7), %s191_s4, 4096  }
  0x58   : > { %1065 = vsyncadd (%p1440_p7), %s191_s4, 4294963200  ;;  %p1441_p13 = scmp.ne.s32.totalorder %s1429_s20, 0 }
  0x5a   : > { %1067 = dma.done.wait (%p1441_p13), [#allocation7], 2048  }
  0x5b   : > { %1069 = vsyncadd (%p1441_p13), [#allocation7], 4294965248  ;;  %v936_v0 = vld [vmem:[#allocation6 + $0x40] sm:$0xff]   ;;  %v938_v2 = vld [vmem:[#allocation6 + $0x48] sm:$0xff]   ;;  %s751_s20 = sshll.u32 %s1279_s27, 7  ;;  %s776_s10 = sshll.u32 %s1088_s15, 11 }
  0x5c   : > { %v937_v1 = vld [vmem:[#allocation6] sm:$0xff]   ;;  %777 = vmatprep.subr.bf16.mxu0 %v936_v0  ;;  %841 = vmatprep.subr.bf16.mxu1 %v936_v0  ;;  %v939_v3 = vld [vmem:[#allocation6 + $0x8] sm:$0xff]   ;;  %v940_v4 = vld [vmem:[#allocation6 + $0x50] sm:$0xff]   ;;  %s1333_s9 = scalar_lea.vmem [#allocation8], %s751_s20  ;;  %s1364_s7 = scalar_lea.hbm %s1424_s3, %s776_s10 }
  0x5d   : > { %778 = vmatpush3.bf16.msra.mxu0 %v937_v1  ;;  %849 = vmatpush3.bf16.msra.mxu1 %v937_v1  ;;  %v941_v5 = vld [vmem:[#allocation6 + $0x10] sm:$0xff]   ;;  %v942_v6 = vld [vmem:[#allocation6 + $0x58] sm:$0xff]   ;;  %v944_v8 = vld [vmem:[#allocation6 + $0x60] sm:$0xff]   ;;  %s643_s11 = sshll.u32 %s1333_s9, 4  ;;  %s630_s15 = scalar_lea.sflag [#allocation5], %s1279_s27  ;;  %s1366_s11 = int_to_ptr.vmem [resolvable:$true] %s643_s11 }
  0x5e   : > { %779 = vmatprep.subr.bf16.mxu0 %v938_v2  ;;  %842 = vmatprep.subr.bf16.mxu1 %v938_v2  ;;  %v943_v7 = vld [vmem:[#allocation6 + $0x18] sm:$0xff]   ;;  %v945_v9 = vld [vmem:[#allocation6 + $0x20] sm:$0xff]   ;;  %v946_v10 = vld [vmem:[#allocation6 + $0x68] sm:$0xff]   ;;  %s1010_s8 = scalar_lea.vmem %s1366_s11, 2048  ;;  %s1104_s21 = smov [#allocation8]  }
  0x5f   : > { %v246_v11 = vld [vmem:[%s1283_s6 + $0x8] sm:$0xff]  ;;  %v248_v12 = vld [vmem:[%s1283_s6 + $0x18] sm:$0xff]  ;;  %v948_v18 = vld [vmem:[#allocation6 + $0x70] sm:$0xff]   ;;  %p1011_p4 = scmp.ne.s32.totalorder %s1366_s11, %s1010_s8  ;;  %s1014_s19 = sshll.u32 %s1104_s21, 4  ;;  %s1015_s19 = int_to_ptr.vmem [resolvable:$false] %s1014_s19 }
  0x60   : > { %v262_v13 = vld [vmem:[%s1283_s6 + $0x88] sm:$0xff]  ;;  %v278_v14 = vpack.c.bf16 %v248_v12, %v246_v11  ;;  %v264_v15 = vld [vmem:[%s1283_s6 + $0x98] sm:$0xff]  ;;  %v949_v19 = vld [vmem:[#allocation6 + $0x30] sm:$0xff]   ;;  %s1016_s25 = scalar_lea.vmem %s1015_s19, 4096  ;;  %p1017_p12 = scmp.lt.s32.totalorder %s1366_s11, %s1015_s19 }
  0x61   : > { %780 = vmatpush3.bf16.msra.mxu0 %v939_v3  ;;  %850 = vmatpush3.bf16.msra.mxu1 %v939_v3  ;;  %v286_v16 = vpack.c.bf16 %v264_v15, %v262_v13  ;;  %v947_v17 = vld [vmem:[#allocation6 + $0x28] sm:$0xff]   ;;  %v950_v20 = vld [vmem:[#allocation6 + $0x78] sm:$0xff]   ;;  %v245_v22 = vld [vmem:[%s1283_s6] sm:$0xff]  ;;  %p1012_p6 = pnand %p1011_p4, %p1223_p10  ;;  %p1018_p11 = scmp.lt.s32.totalorder %s1016_s25, %s1010_s8 }
  0x62   : > { %781 = vmatprep.subr.bf16.mxu0 %v940_v4  ;;  %843 = vmatprep.subr.bf16.mxu1 %v940_v4  ;;  %v951_v21 = vld [vmem:[#allocation6 + $0x38] sm:$0xff]   ;;  %v247_v23 = vld [vmem:[%s1283_s6 + $0x10] sm:$0xff]  ;;  %v261_v24 = vld [vmem:[%s1283_s6 + $0x80] sm:$0xff] }
  0x63   : > { %474 = vmatprep.mubr.bf16.mxu0 %v278_v14  ;;  %506 = vmatprep.mubr.bf16.mxu1 %v286_v16  ;;  %v263_v25 = vld [vmem:[%s1283_s6 + $0x90] sm:$0xff]  ;;  %v250_v26 = vld [vmem:[%s1283_s6 + $0x28] sm:$0xff]  ;;  %v252_v27 = vld [vmem:[%s1283_s6 + $0x38] sm:$0xff]  ;;  %v277_v30 = vpack.c.bf16 %v247_v23, %v245_v22  ;;  %p1013_p8 = pneg %p1012_p6  ;;  %p1019_p0 = por %p1018_p11, %p1017_p12 }
  0x64   : > { %v266_v28 = vld [vmem:[%s1283_s6 + $0xa8] sm:$0xff]  ;;  %v268_v29 = vld [vmem:[%s1283_s6 + $0xb8] sm:$0xff]  ;;  %v285_v31 = vpack.c.bf16 %v263_v25, %v261_v24  ;;  %v280_v32 = vpack.c.bf16 %v252_v27, %v250_v26  ;;  %v249_v34 = vld [vmem:[%s1283_s6 + $0x20] sm:$0xff] }
  0x65   : > { %782 = vmatpush3.bf16.msra.mxu0 %v941_v5  ;;  %851 = vmatpush3.bf16.msra.mxu1 %v941_v5  ;;  %v288_v33 = vpack.c.bf16 %v268_v29, %v266_v28  ;;  %v251_v35 = vld [vmem:[%s1283_s6 + $0x30] sm:$0xff]  ;;  %v265_v36 = vld [vmem:[%s1283_s6 + $0xa0] sm:$0xff]  ;;  %v254_v38 = vld [vmem:[%s1283_s6 + $0x48] sm:$0xff]  ;;  %p1020_p5 = pnand %p1019_p0, %p1013_p8 }
  0x66   : > { %783 = vmatprep.subr.bf16.mxu0 %v942_v6  ;;  %844 = vmatprep.subr.bf16.mxu1 %v942_v6  ;;  %v267_v37 = vld [vmem:[%s1283_s6 + $0xb0] sm:$0xff]  ;;  %v256_v39 = vld [vmem:[%s1283_s6 + $0x58] sm:$0xff]  ;;  %v270_v40 = vld [vmem:[%s1283_s6 + $0xc8] sm:$0xff]  ;;  %v279_v42 = vpack.c.bf16 %v251_v35, %v249_v34 }
  0x67   : > { %v272_v41 = vld [vmem:[%s1283_s6 + $0xd8] sm:$0xff]  ;;  %v287_v43 = vpack.c.bf16 %v267_v37, %v265_v36  ;;  %v282_v44 = vpack.c.bf16 %v256_v39, %v254_v38  ;;  %v253_v46 = vld [vmem:[%s1283_s6 + $0x40] sm:$0xff]  ;;  %v255_v47 = vld [vmem:[%s1283_s6 + $0x50] sm:$0xff] }
  0x68   : > { %v290_v45 = vpack.c.bf16 %v272_v41, %v270_v40  ;;  %v269_v48 = vld [vmem:[%s1283_s6 + $0xc0] sm:$0xff]  ;;  %v271_v49 = vld [vmem:[%s1283_s6 + $0xd0] sm:$0xff]  ;;  %v258_v50 = vld [vmem:[%s1283_s6 + $0x68] sm:$0xff]  ;;  %v281_v54 = vpack.c.bf16 %v255_v47, %v253_v46 }
  0x69   : > { %784 = vmatpush3.bf16.msra.mxu0 %v943_v7  ;;  %852 = vmatpush3.bf16.msra.mxu1 %v943_v7  ;;  %v260_v51 = vld [vmem:[%s1283_s6 + $0x78] sm:$0xff]  ;;  %v274_v52 = vld [vmem:[%s1283_s6 + $0xe8] sm:$0xff]  ;;  %v289_v55 = vpack.c.bf16 %v271_v49, %v269_v48  ;;  %v257_v58 = vld [vmem:[%s1283_s6 + $0x60] sm:$0xff] }
  0x6a   : > { %785 = vmatprep.subr.bf16.mxu0 %v944_v8  ;;  %845 = vmatprep.subr.bf16.mxu1 %v944_v8  ;;  %v276_v53 = vld [vmem:[%s1283_s6 + $0xf8] sm:$0xff]  ;;  %v284_v56 = vpack.c.bf16 %v260_v51, %v258_v50  ;;  %v259_v59 = vld [vmem:[%s1283_s6 + $0x70] sm:$0xff]  ;;  %v273_v60 = vld [vmem:[%s1283_s6 + $0xe0] sm:$0xff] }
  0x6b   : > { %v292_v57 = vpack.c.bf16 %v276_v53, %v274_v52  ;;  %v275_v61 = vld [vmem:[%s1283_s6 + $0xf0] sm:$0xff]  ;;  %v283_v62 = vpack.c.bf16 %v259_v59, %v257_v58  ;;  %v1329_v3 = vld [vmem:[%s1423_s2] ss:$0 sm:$0xff] }
  0x6c   : > { %v291_v63 = vpack.c.bf16 %v275_v61, %v273_v60 }
  0x6d   : > { %786 = vmatpush3.bf16.msra.mxu0 %v945_v9  ;;  %853 = vmatpush3.bf16.msra.mxu1 %v945_v9 }
  0x6e   : > { %787 = vmatprep.subr.bf16.mxu0 %v946_v10  ;;  %846 = vmatprep.subr.bf16.mxu1 %v946_v10 }
  0x71   : > { %788 = vmatpush3.bf16.msra.mxu0 %v947_v17  ;;  %854 = vmatpush3.bf16.msra.mxu1 %v947_v17 }
  0x72   : > { %789 = vmatprep.subr.bf16.mxu0 %v948_v18  ;;  %847 = vmatprep.subr.bf16.mxu1 %v948_v18 }
  0x75   : > { %790 = vmatpush3.bf16.msra.mxu0 %v949_v19  ;;  %855 = vmatpush3.bf16.msra.mxu1 %v949_v19 }
  0x76   : > { %791 = vmatprep.subr.bf16.mxu0 %v950_v20  ;;  %848 = vmatprep.subr.bf16.mxu1 %v950_v20 }
  0x79   : > { %792 = vmatpush3.bf16.msra.mxu0 %v951_v21  ;;  %856 = vmatpush3.bf16.msra.mxu1 %v951_v21 }
  0x7c   : > { %475 = vmatmul.mubr.bf16.vlgmr.msra.gmra.mrb[0].mxu0 %v277_v30  ;;  %507 = vmatmul.mubr.bf16.vlgmr.msra.gmra.mrb[0].mxu1 %v285_v31 }
  0x7d   : > { %482 = vmatprep.mubr.bf16.mxu0 %v280_v32  ;;  %514 = vmatprep.mubr.bf16.mxu1 %v288_v33 }
  0x84   : > { %483 = vmatmul.mubr.bf16.gmra.mrb[4].mxu0 %v279_v42  ;;  %515 = vmatmul.mubr.bf16.gmra.mrb[4].mxu1 %v287_v43 }
  0x85   : > { %490 = vmatprep.mubr.bf16.mxu0 %v282_v44  ;;  %522 = vmatprep.mubr.bf16.mxu1 %v290_v45 }
  0x8c   : > { %491 = vmatmul.mubr.bf16.gmra.mrb[8].mxu0 %v281_v54  ;;  %523 = vmatmul.mubr.bf16.gmra.mrb[8].mxu1 %v289_v55 }
  0x8d   : > { %498 = vmatprep.mubr.bf16.mxu0 %v284_v56  ;;  %530 = vmatprep.mubr.bf16.mxu1 %v292_v57 }
  0x94   : > { %499 = vmatmul.mubr.bf16.gmra.mrb[12].mxu0 %v283_v62  ;;  %531 = vmatmul.mubr.bf16.gmra.mrb[12].mxu1 %v291_v63 }
 0x14f   : > { %v793_v0 = vpop.f32.mrb[0].mxu0  ;;  %v817_v1 = vpop.f32.mrb[0].mxu1 }
 0x150   : > { %v794_v2 = vpop.f32.mrb[1].mxu0  ;;  %v818_v4 = vpop.f32.mrb[1].mxu1 }
 0x151   : > { %v795_v5 = vadd.f32 %v794_v2, %v793_v0  ;;  %v819_v6 = vadd.f32 %v818_v4, %v817_v1  ;;  %v796_v7 = vpop.f32.mrb[2].mxu0  ;;  %v820_v8 = vpop.f32.mrb[2].mxu1 }
 0x152   : > { %v797_v9 = vpop.f32.mrb[3].mxu0  ;;  %v821_v10 = vpop.f32.mrb[3].mxu1 }
 0x153   : > { %v597_v11 = vadd.f32 %v795_v5, %v1329_v3  ;;  %v605_v12 = vadd.f32 %v819_v6, %v1329_v3  ;;  %v798_v13 = vadd.f32 %v797_v9, %v796_v7  ;;  %v822_v14 = vadd.f32 %v821_v10, %v820_v8 }
 0x155   : > { %613 = vst [vmem:[%s1333_s9] sm:$0xff] %v597_v11  ;;  %621 = vst [vmem:[%s1333_s9 + $0x40] sm:$0xff] %v605_v12  ;;  %v598_v15 = vadd.f32 %v798_v13, %v1329_v3  ;;  %v606_v16 = vadd.f32 %v822_v14, %v1329_v3 }
 0x157   : > { %614 = vst [vmem:[%s1333_s9 + $0x8] sm:$0xff] %v598_v15  ;;  %622 = vst [vmem:[%s1333_s9 + $0x48] sm:$0xff] %v606_v16  ;;  %v799_v17 = vpop.f32.mrb[4].mxu0  ;;  %v823_v18 = vpop.f32.mrb[4].mxu1 }
 0x158   : > { %v800_v19 = vpop.f32.mrb[5].mxu0  ;;  %v824_v20 = vpop.f32.mrb[5].mxu1 }
 0x159   : > { %v801_v21 = vadd.f32 %v800_v19, %v799_v17  ;;  %v825_v22 = vadd.f32 %v824_v20, %v823_v18  ;;  %v802_v23 = vpop.f32.mrb[6].mxu0  ;;  %v826_v24 = vpop.f32.mrb[6].mxu1 }
 0x15a   : > { %v803_v25 = vpop.f32.mrb[7].mxu0  ;;  %v827_v26 = vpop.f32.mrb[7].mxu1 }
 0x15b   : > { %v599_v27 = vadd.f32 %v801_v21, %v1329_v3  ;;  %v607_v28 = vadd.f32 %v825_v22, %v1329_v3  ;;  %v804_v29 = vadd.f32 %v803_v25, %v802_v23  ;;  %v828_v30 = vadd.f32 %v827_v26, %v826_v24 }
 0x15d   : > { %615 = vst [vmem:[%s1333_s9 + $0x10] sm:$0xff] %v599_v27  ;;  %623 = vst [vmem:[%s1333_s9 + $0x50] sm:$0xff] %v607_v28  ;;  %v600_v31 = vadd.f32 %v804_v29, %v1329_v3  ;;  %v608_v32 = vadd.f32 %v828_v30, %v1329_v3 }
 0x15f   : > { %616 = vst [vmem:[%s1333_s9 + $0x18] sm:$0xff] %v600_v31  ;;  %624 = vst [vmem:[%s1333_s9 + $0x58] sm:$0xff] %v608_v32  ;;  %v805_v33 = vpop.f32.mrb[8].mxu0  ;;  %v829_v34 = vpop.f32.mrb[8].mxu1 }
 0x160   : > { %v806_v35 = vpop.f32.mrb[9].mxu0  ;;  %v830_v36 = vpop.f32.mrb[9].mxu1 }
 0x161   : > { %v807_v37 = vadd.f32 %v806_v35, %v805_v33  ;;  %v831_v38 = vadd.f32 %v830_v36, %v829_v34  ;;  %v808_v39 = vpop.f32.mrb[10].mxu0  ;;  %v832_v40 = vpop.f32.mrb[10].mxu1 }
 0x162   : > { %v809_v41 = vpop.f32.mrb[11].mxu0  ;;  %v833_v42 = vpop.f32.mrb[11].mxu1 }
 0x163   : > { %v601_v43 = vadd.f32 %v807_v37, %v1329_v3  ;;  %v609_v44 = vadd.f32 %v831_v38, %v1329_v3  ;;  %v810_v45 = vadd.f32 %v809_v41, %v808_v39  ;;  %v834_v46 = vadd.f32 %v833_v42, %v832_v40 }
 0x165   : > { %617 = vst [vmem:[%s1333_s9 + $0x20] sm:$0xff] %v601_v43  ;;  %625 = vst [vmem:[%s1333_s9 + $0x60] sm:$0xff] %v609_v44  ;;  %v602_v47 = vadd.f32 %v810_v45, %v1329_v3  ;;  %v610_v48 = vadd.f32 %v834_v46, %v1329_v3 }
 0x167   : > { %618 = vst [vmem:[%s1333_s9 + $0x28] sm:$0xff] %v602_v47  ;;  %626 = vst [vmem:[%s1333_s9 + $0x68] sm:$0xff] %v610_v48  ;;  %v811_v49 = vpop.f32.mrb[12].mxu0  ;;  %v835_v50 = vpop.f32.mrb[12].mxu1 }
 0x168   : > { %v812_v51 = vpop.f32.mrb[13].mxu0  ;;  %v836_v52 = vpop.f32.mrb[13].mxu1 }
 0x169   : > { %v813_v53 = vadd.f32 %v812_v51, %v811_v49  ;;  %v837_v54 = vadd.f32 %v836_v52, %v835_v50  ;;  %v814_v55 = vpop.f32.mrb[14].mxu0  ;;  %v838_v56 = vpop.f32.mrb[14].mxu1 }
 0x16a   : > { %v815_v57 = vpop.f32.mrb[15].mxu0  ;;  %v839_v58 = vpop.f32.mrb[15].mxu1 }
 0x16b   : > { %v603_v59 = vadd.f32 %v813_v53, %v1329_v3  ;;  %v611_v60 = vadd.f32 %v837_v54, %v1329_v3  ;;  %v816_v61 = vadd.f32 %v815_v57, %v814_v55  ;;  %v840_v62 = vadd.f32 %v839_v58, %v838_v56 }
 0x16d   : > { %619 = vst [vmem:[%s1333_s9 + $0x30] sm:$0xff] %v603_v59  ;;  %627 = vst [vmem:[%s1333_s9 + $0x70] sm:$0xff] %v611_v60  ;;  %v604_v63 = vadd.f32 %v816_v61, %v1329_v3  ;;  %v612_v0 = vadd.f32 %v840_v62, %v1329_v3 }
 0x16f   : > { %620 = vst [vmem:[%s1333_s9 + $0x38] sm:$0xff] %v604_v63  ;;  %628 = vst [vmem:[%s1333_s9 + $0x78] sm:$0xff] %v612_v0 }
 0x170   : > { %1023 = shalt.err (!%p1020_p5)
}
 0x171   : > { %s1024_s29 = scalar_lea.hbm %s1364_s7, 2048  ;;  %s1028_s20 = scalar_lea.hbm %s1424_s3, 4096 }
 0x172   : > { %p1025_p9 = scmp.ne.s32.totalorder %s1364_s7, %s1024_s29  ;;  %p1029_p3 = scmp.lt.u32.totalorder %s1364_s7, %s1424_s3 }
 0x173   : > { %p1030_p7 = scmp.lt.u32.totalorder %s1028_s20, %s1024_s29  ;;  %p1032_p4 = scmp.lt.u32.totalorder %s1024_s29, %s1364_s7 }
 0x174   : > { %p1026_p1 = pnand %p1025_p9, %p1223_p10 }
 0x175   : > { %p1031_p13 = por %p1030_p7, %p1029_p3 }
 0x176   : > { %p1027_p2 = pneg %p1026_p1 }
 0x177   : > { %p1033_p6 = por %p1032_p4, %p1031_p13 }
 0x179   : > { %p1034_p8 = pnand %p1033_p6, %p1027_p2 }
 0x17b   : > { %1037 = shalt.err (!%p1034_p8)
}
 0x17c   : > { %s1105_s9 = smov 128   ;;  %s1106_s10 = smov 8  }
 0x17d   : > { %863 = dma.vmem_to_hbm [thread:$0]  (%p1223_p10), %s1366_s11, 2048, %s1364_s7, %s630_s15, %s1105_s9, %s1105_s9, %s1106_s10  }
 0x17e PF: > { %s658_s18 = sand.u32 1, %s1076_s12   ;;  %p1442_p12 = scmp.ne.s32.totalorder %s1432_s23, 0 }
 0x17f   : > { %p1443_p11 = scmp.ge.s32.totalorder %s1096_s17, 2  ;;  %s659_s26 = scalar_lea.sflag [#allocation5], %s658_s18 }
 0x181   : > { %p874_p0 = pnand %p1443_p11, %p1442_p12 }
 0x183   : > { %1071 = dma.done.wait (!%p874_p0), %s659_s26, 2048  }
 0x184   : > { %1073 = vsyncadd (!%p874_p0), %s659_s26, 4294965248  ;;  %s20_s17 = sadd.s32 1, %s1096_s17   ;;  %s1444_s12 = smov %s1080_s13 }
 0x185   : > { %p17_p5 = scmp.ge.s32.totalorder %s20_s17, 4   ;;  %s1445_s13 = smov %s1084_s14 }
 0x186   : > { %s1446_s14 = smov %s1232_s5  ;;  %s1447_s15 = smov %s1092_s16 }
 0x187   : > { %s1448_s16 = smov %s1450_s28  ;;  %19 = sbr.rel (!%p17_p5) target bundleno = 7 (0x7), region = 90 }
 0x18e   :  { %664 = vsyncpa [#allocation4], 1 }
 0x18f   :  { %666 = vsyncpa [#allocation4 + $0x1], 1 }
 0x190   :  { %667 = vsyncpa [#allocation7], 1 }
 0x191   :  { %668 = vsyncpa [#allocation5], 1 }
 0x192   :  { %670 = vsyncpa [#allocation5 + $0x1], 1 }

</bundles_post_ra>
